<compile_context>
chip_gen: v7x
topology: tpu7x:2x2x1
jax: 0.10.0
libtpu: 0.0.40
codegen_flags: <defaults>
</compile_context>

<pallas_src>
import functools
import math

import jax
import jax.numpy as jnp
from jax import lax
from jax.experimental import pallas as pl
from jax.experimental.pallas import tpu as pltpu


# --------------------------------------------------------------------------
# small helpers / per-generation VMEM budget
# --------------------------------------------------------------------------

def _round_up(x, m):
    return ((x + m - 1) // m) * m


def _cdiv(a, b):
    return (a + b - 1) // b


def _largest_divisor_leq(n, cap):
    cap = max(1, min(n, cap))
    for d in range(cap, 0, -1):
        if n % d == 0:
            return d
    return 1


def _physical_vmem_bytes():
    try:
        info = pltpu.get_tpu_info()
        cap = int(getattr(info, "vmem_capacity_bytes", 0))
        if cap > 0:
            return min(cap, 128 << 20)
    except Exception:
        pass
    return 64 << 20          # conservative lower bound (v7x); v5e/v6e have 128 MiB


_PHYS_VMEM = _physical_vmem_bytes()
_TILE_BUDGET = int(_PHYS_VMEM * 0.55)   # used when sizing tiles (incl. double buffers)
_VMEM_LIMIT = int(_PHYS_VMEM * 0.70)    # scoped-VMEM allowance passed to Mosaic


# --------------------------------------------------------------------------
# 1x1 conv  ==  row-tiled matmul on the MXU (top level / non-topdown levels)
# --------------------------------------------------------------------------

def _conv1x1_kernel(x_ref, w_ref, b_ref, o_ref):
    o_ref[...] = (
        jnp.dot(x_ref[...], w_ref[...], preferred_element_type=jnp.float32)
        + b_ref[...]
    )


def conv1x1(x_rows, w, b):
    """x_rows: (R, C) f32/bf16, w: (C, Dp) same dtype, b: (1, Dp) f32 -> (R, Dp) f32."""
    R, C = x_rows.shape
    Dp = w.shape[1]
    bx = jnp.dtype(x_rows.dtype).itemsize
    bw = jnp.dtype(w.dtype).itemsize

    fixed = 2 * C * Dp * bw + 2 * Dp * 4
    per_row = 2 * (C * bx + Dp * 4)
    tr_cap = max(16, (_TILE_BUDGET - fixed) // max(per_row, 1))
    Tr = min(4096, tr_cap, _round_up(R, 16))
    Tr = max(16, (Tr // 16) * 16)
    if _cdiv(R, Tr) < 2 and R >= 32:            # keep both TensorCores busy
        Tr = _round_up(_cdiv(R, 2), 16)
    grid = (_cdiv(R, Tr),)

    return pl.pallas_call(
        _conv1x1_kernel,
        out_shape=jax.ShapeDtypeStruct((R, Dp), jnp.float32),
        grid=grid,
        in_specs=[
            pl.BlockSpec((Tr, C), lambda i: (i, 0)),
            pl.BlockSpec((C, Dp), lambda i: (0, 0)),
            pl.BlockSpec((1, Dp), lambda i: (0, 0)),
        ],
        out_specs=pl.BlockSpec((Tr, Dp), lambda i: (i, 0)),   # lane-dense (Dp % 128 == 0)
        compiler_params=pltpu.CompilerParams(
            dimension_semantics=("parallel",),
            vmem_limit_bytes=_VMEM_LIMIT),
    )(x_rows, w, b)


# --------------------------------------------------------------------------
# Fused top-down kernel: 1x1 conv + 2x bilinear upsample (H & W) + add (+ /2)
# --------------------------------------------------------------------------

def _upsample_matrix_inkernel(n_out, n_in):
    """(n_out, n_in) matrix of F.interpolate(scale=2, 'bilinear', align_corners=False)."""
    k = lax.broadcasted_iota(jnp.int32, (n_out, n_in), 0)
    c = lax.broadcasted_iota(jnp.int32, (n_out, n_in), 1)
    center = k // 2
    nbr = jnp.where(k % 2 == 0,
                    jnp.maximum(center - 1, 0),
                    jnp.minimum(center + 1, n_in - 1))
    return (0.75 * (c == center).astype(jnp.float32)
            + 0.25 * (c == nbr).astype(jnp.float32))


def _fused_topdown_kernel(x_ref, w_ref, b_ref, prev_ref, top_ref, bot_ref,
                          o_ref, upw_ref, *, hb, avg):
    # x_ref   : (1, 2*hb, W, C)   lateral conv input rows for this output block
    # w_ref   : (C, Dp), b_ref: (1, Dp)
    # prev_ref: (1, hb, Wp, Dp)   coarse rows [h0, h0 + hb)
    # top/bot : (1, 1, Wp, Dp)    edge-clamped rows h0-1 / h0+hb (H halo)
    # o_ref   : (1, 2*hb, W, Dp)
    # upw_ref : (hb+2, W, Dp)     VMEM scratch: W-upsampled prev window rows
    Wp = prev_ref.shape[2]
    W = o_ref.shape[2]

    u = _upsample_matrix_inkernel(W, Wp)              # VPU filler, no operand DMA

    # W-axis interpolation of the (hb + 2)-row window (MXU) into scratch.
    upw_ref[0] = jnp.dot(u, top_ref[0, 0], preferred_element_type=jnp.float32)
    upw_ref[hb + 1] = jnp.dot(u, bot_ref[0, 0], preferred_element_type=jnp.float32)
    for j in range(hb):
        upw_ref[j + 1] = jnp.dot(u, prev_ref[0, j],
                                 preferred_element_type=jnp.float32)

    # Per output row pair: fused 1x1 conv (MXU) + H-axis interp (VPU) + add.
    for k in range(hb):
        mid = upw_ref[k + 1]
        up_even = 0.75 * mid + 0.25 * upw_ref[k]
        up_odd = 0.75 * mid + 0.25 * upw_ref[k + 2]
        lat_e = jnp.dot(x_ref[0, 2 * k], w_ref[...],
                        preferred_element_type=jnp.float32) + b_ref[...]
        lat_o = jnp.dot(x_ref[0, 2 * k + 1], w_ref[...],
                        preferred_element_type=jnp.float32) + b_ref[...]
        res_e = lat_e + up_even
        res_o = lat_o + up_odd
        if avg:
            res_e = res_e * 0.5
            res_o = res_o * 0.5
        o_ref[0, 2 * k] = res_e
        o_ref[0, 2 * k + 1] = res_o


def fused_conv_topdown(x_nhwc, w, b, prev, *, avg):
    """out = conv1x1(x) + 2x bilinear upsample(prev) (optionally / 2); NHWC f32."""
    B, H, W, C = x_nhwc.shape
    Bp, Hp, Wp, Dp = prev.shape
    assert (Bp, 2 * Hp, 2 * Wp) == (B, H, W), (prev.shape, x_nhwc.shape)
    bx = jnp.dtype(x_nhwc.dtype).itemsize
    bw = jnp.dtype(w.dtype).itemsize

    # double-buffered operand + scratch footprint as a function of hb
    fixed = (2 * C * Dp * bw + 2 * Dp * 4            # weight, bias
             + 2 * (2 * Wp * Dp * 4)                 # two halo rows
             + 2 * W * Dp * 4)                       # scratch halo rows
    per_hb = (2 * (2 * W * C * bx)                   # x rows
              + 2 * (Wp * Dp * 4)                    # prev rows
              + 2 * (2 * W * Dp * 4)                 # out rows
              + W * Dp * 4)                          # scratch row
    cap = max(1, (_TILE_BUDGET - fixed) // max(per_hb, 1))
    hb = _largest_divisor_leq(Hp, min(16, cap))
    if B == 1 and Hp // hb < 2 and Hp >= 2:          # keep >= 2 grid steps (2 TCs)
        hb = _largest_divisor_leq(Hp, max(1, hb // 2))
    grid = (B, Hp // hb)

    return pl.pallas_call(
        functools.partial(_fused_topdown_kernel, hb=hb, avg=avg),
        out_shape=jax.ShapeDtypeStruct((B, H, W, Dp), jnp.float32),
        grid=grid,
        in_specs=[
            pl.BlockSpec((1, 2 * hb, W, C), lambda bb, h: (bb, h, 0, 0)),
            pl.BlockSpec((C, Dp), lambda bb, h: (0, 0)),
            pl.BlockSpec((1, Dp), lambda bb, h: (0, 0)),
            pl.BlockSpec((1, hb, Wp, Dp), lambda bb, h: (bb, h, 0, 0)),
            pl.BlockSpec((1, 1, Wp, Dp),
                         lambda bb, h: (bb, jnp.maximum(h * hb - 1, 0), 0, 0)),
            pl.BlockSpec((1, 1, Wp, Dp),
                         lambda bb, h: (bb, jnp.minimum(h * hb + hb, Hp - 1), 0, 0)),
        ],
        out_specs=pl.BlockSpec((1, 2 * hb, W, Dp), lambda bb, h: (bb, h, 0, 0)),
        scratch_shapes=[pltpu.VMEM((hb + 2, W, Dp), jnp.float32)],
        compiler_params=pltpu.CompilerParams(
            dimension_semantics=("parallel", "parallel"),
            vmem_limit_bytes=_VMEM_LIMIT),
    )(x_nhwc, w, b, prev, prev, prev)


# --------------------------------------------------------------------------
# PositionEmbeddingSine (normalize=True, temperature=1e4, scale=2*pi)
# Pure function of (d_model, H, W) -> computed once per shape and cached.
# --------------------------------------------------------------------------

def _sincos_table(n, half, *, temperature=10000.0, eps=1e-6):
    """(half, n): row 2k = sin(pos/dim_t[2k]), row 2k+1 = cos(pos/dim_t[2k+1])."""
    pos = (jnp.arange(1, n + 1, dtype=jnp.float32) / (n + eps)) * (2.0 * math.pi)
    dim_t = temperature ** (
        2.0 * jnp.floor(jnp.arange(half, dtype=jnp.float32) / 2.0) / half)
    phase = pos[None, :] / dim_t[:, None]             # (half, n)
    tab = jnp.stack([jnp.sin(phase[0::2]), jnp.cos(phase[1::2])], axis=1)
    return tab.reshape(half, n)


def _pos_broadcast_kernel(ty_ref, tx_ref, o_ref, *, cb, h, w, y_blocks):
    c = pl.program_id(0)

    @pl.when(c < y_blocks)                            # y half: const along W (lanes)
    def _():
        o_ref[0] = jnp.broadcast_to(ty_ref[...], (cb, h, w))

    @pl.when(c >= y_blocks)                           # x half: const along H (sublanes)
    def _():
        o_ref[0] = jnp.broadcast_to(tx_ref[...], (cb, h, w))


_POS_CACHE = {}


def position_encoding_sine(shape_nchw, d_model):
    """PositionEmbeddingSine(normalize=True), NCHW; cached per shape."""
    B, _, H, W = shape_nchw
    key = (B, d_model, H, W)
    cached = _POS_CACHE.get(key)
    if cached is not None:
        return cached

    assert d_model % 4 == 0
    half = d_model // 2
    ty = _sincos_table(H, half)[:, :, None]           # (half, H, 1)
    tx = _sincos_table(W, half)[:, None, :]           # (half, 1, W)

    cb = _largest_divisor_leq(half, max(1, (4 * 1024 * 1024) // (H * W * 4)))
    y_blocks = half // cb
    grid = (d_model // cb,)
    pos1 = pl.pallas_call(
        functools.partial(_pos_broadcast_kernel, cb=cb, h=H, w=W,
                          y_blocks=y_blocks),
        out_shape=jax.ShapeDtypeStruct((1, d_model, H, W), jnp.float32),
        grid=grid,
        in_specs=[
            pl.BlockSpec((cb, H, 1),
                         lambda c: (jnp.minimum(c, y_blocks - 1), 0, 0)),
            pl.BlockSpec((cb, 1, W),
                         lambda c: (jnp.maximum(c - y_blocks, 0), 0, 0)),
        ],
        out_specs=pl.BlockSpec((1, cb, H, W), lambda c: (0, c, 0, 0)),
        compiler_params=pltpu.CompilerParams(
            dimension_semantics=("parallel",),
            vmem_limit_bytes=_VMEM_LIMIT),
    )(ty, tx)
    pos = jnp.broadcast_to(pos1, (B, d_model, H, W))
    _POS_CACHE[key] = pos
    return pos


# --------------------------------------------------------------------------
# FpnNeck forward
# --------------------------------------------------------------------------

def fpn_neck_forward(xs, conv_ws, conv_bs, *, d_model, fuse_type="sum",
                     fpn_top_down_levels=None, matmul_dtype=jnp.float32):
    num = len(conv_ws)
    n = num - 1
    if fpn_top_down_levels is None:
        fpn_top_down_levels = list(range(num))
    out = [None] * num
    pos = [None] * num
    Dp = _round_up(d_model, 128)              # lane-dense internal channel width

    xs = xs[::-1]
    prev = None                               # NHWC f32 with Dp (padded) channels
    for i in range(n, -1, -1):
        x = xs[i]                             # (W, H, C, B); module permutes to NCHW
        Wx, Hx, C, B = x.shape
        x_nhwc = jnp.transpose(x, (3, 1, 0, 2))                # (B, H, W, C)
        if matmul_dtype != jnp.float32:
            x_nhwc = x_nhwc.astype(matmul_dtype)               # halve activation DMA

        w2d = jnp.transpose(conv_ws[n - i][:, :, 0, 0])        # (C, d_model)
        b1d = conv_bs[n - i]
        if Dp != d_model:                                      # pad to 128 lanes
            w2d = jnp.pad(w2d, ((0, 0), (0, Dp - d_model)))
            b1d = jnp.pad(b1d, (0, Dp - d_model))
        w2d = w2d.astype(matmul_dtype)
        b2d = b1d.reshape(1, Dp).astype(jnp.float32)

        if i in fpn_top_down_levels and prev is not None:
            # one kernel: 1x1 conv + 2x bilinear upsample + add (+ /2)
            prev = fused_conv_topdown(x_nhwc, w2d, b2d, prev,
                                      avg=(fuse_type == "avg"))
        else:
            x_rows = x_nhwc.reshape(B * Hx * Wx, C)
            prev = conv1x1(x_rows, w2d, b2d).reshape(B, Hx, Wx, Dp)

        # module boundary: drop lane padding, NHWC -> NCHW.
        # TODO(synk): this transpose is an extra HBM round trip per level; drop
        # it if the consumer accepts channels-last outputs.
        out[i] = jnp.transpose(prev[..., :d_model], (0, 3, 1, 2))
        pos[i] = position_encoding_sine((B, d_model, Hx, Wx),
                                        d_model).astype(out[i].dtype)
    return out, pos


# --------------------------------------------------------------------------
# Pure-JAX references (validation only)
# --------------------------------------------------------------------------

def _ref_upsample2x(x_nchw):
    def idx_w(nn):
        dst = jnp.arange(2 * nn, dtype=jnp.float32)
        src = jnp.maximum((dst + 0.5) * 0.5 - 0.5, 0.0)
        i0 = jnp.floor(src).astype(jnp.int32)
        frac = src - i0.astype(jnp.float32)
        i1 = jnp.minimum(i0 + 1, nn - 1)
        return i0, i1, frac

    B, C, H, W = x_nchw.shape
    ih0, ih1, fh = idx_w(H)
    t = (x_nchw[:, :, ih0, :] * (1 - fh)[None, None, :, None]
         + x_nchw[:, :, ih1, :] * fh[None, None, :, None])
    iw0, iw1, fw = idx_w(W)
    t = t[:, :, :, iw0] * (1 - fw) + t[:, :, :, iw1] * fw
    return t


def _ref_forward(xs, conv_ws, conv_bs):
    n = len(conv_ws) - 1
    out = [None] * len(conv_ws)
    xs = xs[::-1]
    prev = None
    for i in range(n, -1, -1):
        x_nchw = jnp.transpose(xs[i], (3, 2, 1, 0))
        lat = (jnp.einsum("bchw,dc->bdhw", x_nchw, conv_ws[n - i][:, :, 0, 0])
               + conv_bs[n - i][None, :, None, None])
        prev = lat if prev is None else lat + _ref_upsample2x(prev)
        out[i] = prev
    return out


def _ref_pos(shape_nchw, d_model):
    B, _, H, W = shape_nchw
    half = d_model // 2
    y = (jnp.arange(1, H + 1, dtype=jnp.float32) / (H + 1e-6)) * (2 * math.pi)
    x = (jnp.arange(1, W + 1, dtype=jnp.float32) / (W + 1e-6)) * (2 * math.pi)
    dim_t = 10000.0 ** (2.0 * jnp.floor(jnp.arange(half, dtype=jnp.float32) / 2.0) / half)
    py = jnp.broadcast_to(y[None, :, None, None] / dim_t, (B, H, W, half))
    px = jnp.broadcast_to(x[None, None, :, None] / dim_t, (B, H, W, half))

    def interleave(p):
        return jnp.stack([jnp.sin(p[..., 0::2]), jnp.cos(p[..., 1::2])],
                         axis=-1).reshape(B, H, W, half)

    pos = jnp.concatenate([interleave(py), interleave(px)], axis=-1)
    return jnp.transpose(pos, (0, 3, 1, 2))


# --------------------------------------------------------------------------

if __name__ == "__main__":
    key = jax.random.PRNGKey(0)
    d_model = 32
    backbone_channel_list = [16, 8, 4]     # conv j : C_in = backbone_channel_list[j]
    batch = 2
    spatials = [4, 8, 16]                  # each level doubles the previous spatial

    xs, conv_ws, conv_bs = [], [], []
    for c, s in zip(backbone_channel_list, spatials):
        key, k1, k2, k3 = jax.random.split(key, 4)
        # xs[j]: (W, H, C_j, B) so that permute(3,2,1,0) -> (B, C_j, H, W)
        xs.append(jax.random.normal(k1, (s, s, c, batch), dtype=jnp.float32))
        conv_ws.append(jax.random.normal(k2, (d_model, c, 1, 1), dtype=jnp.float32) * 0.05)
        conv_bs.append(jax.random.normal(k3, (d_model,), dtype=jnp.float32) * 0.05)

    out, pos = fpn_neck_forward(xs, conv_ws, conv_bs, d_model=d_model)
    jax.block_until_ready(out)
    jax.block_until_ready(pos)

    # validate against a pure-JAX reference of the same forward pass
    ref_out = _ref_forward(xs, conv_ws, conv_bs)
    for a, b in zip(out, ref_out):
        assert a.shape == b.shape, (a.shape, b.shape)
        assert jnp.allclose(a, b, atol=1e-4, rtol=1e-4), float(jnp.max(jnp.abs(a - b)))
    for p, o in zip(pos, out):
        rp = _ref_pos(o.shape, d_model)
        assert p.shape == o.shape
        assert jnp.allclose(p, rp, atol=1e-4, rtol=1e-4), float(jnp.max(jnp.abs(p - rp)))

    # bf16-MXU path (all gens): bf16 activations/weights into the MXU, f32
    # accumulation, f32 upsample/add.
    out_bf16, _ = fpn_neck_forward(xs, conv_ws, conv_bs, d_model=d_model,
                                   matmul_dtype=jnp.bfloat16)
    jax.block_until_ready(out_bf16)
    for a, b in zip(out_bf16, ref_out):
        assert jnp.allclose(a, b, atol=5e-2, rtol=5e-2), float(jnp.max(jnp.abs(a - b)))

    print("KERNEL_OK")
</pallas_src>

<mosaic_0001>
module attributes {stable_mosaic.version = 11 : i64} {
  func.func @_conv1x1_kernel(%arg0: i32, %arg1: memref<16x16xf32, #tpu.memory_space<vmem>>, %arg2: memref<16x128xf32, #tpu.memory_space<vmem>>, %arg3: memref<1x128xf32, #tpu.memory_space<vmem>>, %arg4: memref<16x128xf32, #tpu.memory_space<vmem>>) attributes {dimension_semantics = [#tpu.dimension_semantics<parallel>], iteration_bounds = array<i64: 2>, scalar_prefetch = 0 : i64, scratch_operands = 0 : i64, tpu.core_type = #tpu.core_type<tc>, window_params = [{transform_indices = @transform_0, window_bounds = array<i64: 16, 16>}, {pipeline_mode = #tpu.pipeline_mode<synchronous>, transform_indices = @transform_1, window_bounds = array<i64: 16, 128>}, {pipeline_mode = #tpu.pipeline_mode<synchronous>, transform_indices = @transform_2, window_bounds = array<i64: 1, 128>}, {transform_indices = @transform_3, window_bounds = array<i64: 16, 128>}]} {
    %c0 = arith.constant 0 : index
    %c0_0 = arith.constant 0 : index
    %0 = vector.load %arg1[%c0, %c0_0] : memref<16x16xf32, #tpu.memory_space<vmem>>, vector<16x16xf32>
    %c0_1 = arith.constant 0 : index
    %c0_2 = arith.constant 0 : index
    %1 = vector.load %arg2[%c0_1, %c0_2] : memref<16x128xf32, #tpu.memory_space<vmem>>, vector<16x128xf32>
    %cst = arith.constant dense<0.000000e+00> : vector<16x128xf32>
    %2 = tpu.matmul %0, %1, %cst {dimension_numbers = #tpu.dot_dimension_numbers<[1], [0], [0], [1], [0, 0, 1, 1], [], []>} : vector<16x16xf32>, vector<16x128xf32>, vector<16x128xf32> -> vector<16x128xf32>
    %c0_3 = arith.constant 0 : index
    %c0_4 = arith.constant 0 : index
    %3 = vector.load %arg3[%c0_3, %c0_4] : memref<1x128xf32, #tpu.memory_space<vmem>>, vector<1x128xf32>
    %4 = vector.broadcast %3 : vector<1x128xf32> to vector<16x128xf32>
    %5 = arith.addf %2, %4 : vector<16x128xf32>
    %c0_5 = arith.constant 0 : index
    %c0_6 = arith.constant 0 : index
    %6 = vector.load %arg4[%c0_5, %c0_6] : memref<16x128xf32, #tpu.memory_space<vmem>>, vector<16x128xf32>
    tpu.vector_store %arg4[%c0_5, %c0_6], %5 {strides = array<i32>} : memref<16x128xf32, #tpu.memory_space<vmem>>, vector<16x128xf32>,
    return
  }
  func.func @transform_0(%arg0: i32) -> (i32, i32) {
    %c0_i32 = arith.constant 0 : i32
    %c0_i32_0 = arith.constant 0 : i32
    return %arg0, %c0_i32 : i32, i32
  }
  func.func @transform_1(%arg0: i32) -> (i32, i32) {
    %c0_i32 = arith.constant 0 : i32
    %c0_i32_0 = arith.constant 0 : i32
    %c0_i32_1 = arith.constant 0 : i32
    return %c0_i32, %c0_i32_0 : i32, i32
  }
  func.func @transform_2(%arg0: i32) -> (i32, i32) {
    %c0_i32 = arith.constant 0 : i32
    %c0_i32_0 = arith.constant 0 : i32
    %c0_i32_1 = arith.constant 0 : i32
    return %c0_i32, %c0_i32_0 : i32, i32
  }
  func.func @transform_3(%arg0: i32) -> (i32, i32) {
    %c0_i32 = arith.constant 0 : i32
    %c0_i32_0 = arith.constant 0 : i32
    return %arg0, %c0_i32 : i32, i32
  }
}

</mosaic_0001>

<bundles_post_ra>
// kernel: tpu_custom_call.1
= control target key start
LH: loop header
LB: loop body
LE: loop exit
PB: predicated region body
PF: predicated region fallthrough
CT: control target
= control target key end

     0   :  { %8 = vsyncpa [#allocation3], 0  ;;  %s613_s0 = inlined_call_operand.vmem [shape: f32[32,16], index: 0, kind: input, shape index: {}]   ;;  %s614_s1 = inlined_call_operand.vmem [shape: f32[16,128], index: 1, kind: input, shape index: {}]   ;;  %s615_s2 = inlined_call_operand.vmem [shape: f32[1,128], index: 2, kind: input, shape index: {}]   ;;  %s616_s3 = inlined_call_operand.hbm [shape: f32[32,128], index: 3, kind: output, shape index: {}]  }
   0x1   :  { %10 = vsyncpa [#allocation3 + $0x1], 0  ;;  %s502_s12 = smov 0   ;;  %s504_s13 = smov 0  }
   0x2   :  { %s506_s14 = smov 0   ;;  %s508_s15 = smov 0  }
   0x3 LB: > { %s523_s16 = sadd.s32 4294967295, %s477_s15   ;;  %s343_s17 = sadd.s32 4294967294, %s477_s15   ;;  %s477_s15 = sphi %s508_s15, %s622_s15   ;;  %s473_s14 = sphi %s506_s14, %s621_s14   ;;  %s469_s13 = sphi %s504_s13, %s620_s13   ;;  %s465_s12 = sphi %s502_s12, %s619_s12  }
   0x4   : > { %s527_s18 = sadd.s32 1, %s477_s15   ;;  %s91_s19 = sadd.s32 1, %s473_s14 }
   0x5   : > { %s88_s20 = ssub.s32 %s477_s15, %s527_s18  ;;  %p101_p0 = scmp.ne.s32.totalorder %s473_s14, %s469_s13 }
   0x6   : > { %p89_p1 = scmp.eq.s32.totalorder %s88_s20, 0  ;;  %p102_p2 = scmp.eq.s32.totalorder %s523_s16, 1 }
   0x7   : > { %p107_p3 = scmp.ne.s32.totalorder %s469_s13, %s465_s12  ;;  %p108_p4 = scmp.eq.s32.totalorder %s343_s17, 1 }
   0x8   : > { %s538_s21 = scalar_select %p89_p1, %s473_s14, %s91_s19  }
   0x9   : > { %p540_p5 = por %p102_p2, %p101_p0  ;;  %p544_p6 = por %p108_p4, %p107_p3 }
   0xa   : > { %p346_p7 = scmp.ge.s32.totalorder %s477_s15, 1  ;;  %p141_p8 = scmp.lt.s32.totalorder %s477_s15, 3 }
   0xc   : > { %p142_p9 = pnand %p346_p7, %p141_p8 }
   0xd   : > { %v174_v0 = vld [vmem:[%s614_s1] sm:$0xff] (!%p142_p9)  ;;  %v175_v1 = vld [vmem:[%s614_s1 + $0x8] sm:$0xff] (!%p142_p9)  ;;  %s348_s28 = sshll.u32 (!%p142_p9), %s523_s16, 1  ;;  %vm183_vm0 = vcmask (!%p142_p9), 130048   ;;  %s162_s6 = sand.u32 (!%p142_p9), 1, %s469_s13  }
   0xe   : > { %145 = sbr.rel (%p142_p9) target bundleno = 256 (0x100), region = 32  ;;  %v370_v2 = vpack.c.bf16 (!%p142_p9), %v175_v1, %v174_v0  ;;  %p166_p10 = scmp.lt.s32.totalorder (!%p142_p9), %s348_s28, 3  ;;  %v350_v5 = vld [vmem:[%s615_s2] ss:$0 sm:$0xff] (!%p142_p9) }
   0xf   : > { %s347_s7 = sshll.u32 (!%p142_p9), %s162_s6, 4  ;;  %s358_s17 = sshll.u32 (!%p142_p9), %s523_s16, 8 }
  0x10   : > { %371 = vmatprep.subr.bf16.mxu0 (!%p142_p9), %v370_v2  ;;  %s164_s10 = scalar_lea.vmem (!%p142_p9), [#allocation2], %s347_s7  ;;  %s570_s24 = scalar_lea.hbm (!%p142_p9), %s616_s3, %s358_s17 }
  0x11   : > { %373 = vmatpush3.bf16.msra.mxu0 (!%p142_p9), %v370_v2  ;;  %s281_s11 = sshll.u32 (!%p142_p9), %s164_s10, 4  ;;  %s572_s25 = scalar_lea.sflag (!%p142_p9), [#allocation3], %s162_s6  ;;  %s565_s11 = int_to_ptr.vmem [resolvable:$true] %s281_s11 }
  0x12   : > { %s415_s26 = scalar_lea.vmem (!%p142_p9), %s565_s11, 256  ;;  %s479_s16 = smov (!%p142_p9), [#allocation2]  }
  0x13   : > { %p416_p11 = scmp.ne.s32.totalorder (!%p142_p9), %s565_s11, %s415_s26  ;;  %s419_s27 = sshll.u32 (!%p142_p9), %s479_s16, 4  ;;  %s420_s27 = int_to_ptr.vmem [resolvable:$false] %s419_s27 }
  0x14   : > { %p422_p0 = scmp.lt.s32.totalorder (!%p142_p9), %s565_s11, %s420_s27 }
  0x15   : > { %s624_s28 = smov (!%p166_p10, %s348_s28), 3  ;;  %p417_p12 = pnand %p416_p11, %p540_p5 }
  0x16   : > { %s349_s29 = sshll.u32 %s624_s28, 3  ;;  %s421_s28 = scalar_lea.vmem %s420_s27, 512 }
  0x17   : > { %s169_s5 = scalar_lea.vmem %s613_s0, %s349_s29  ;;  %p418_p13 = pneg %p417_p12 }
  0x18   : > { %v172_v3 = vld [vmem:[%s169_s5] sm:$0xff]  ;;  %v173_v4 = vld [vmem:[%s169_s5 + $0x8] sm:$0xff]  ;;  %p423_p1 = scmp.lt.s32.totalorder %s421_s28, %s415_s26 }
  0x19   : > { %367 = vmatprep.mubr.msk.f32.mxu0 %vm183_vm0, %v172_v3 }
  0x1a   : > { %368 = vmatmul.mubr.msk.f32.vlgmr.msra.gmra.mrb[0].mxu0 %vm183_vm0, %v173_v4  ;;  %p424_p2 = por %p423_p1, %p422_p0 }
  0x1c   : > { %p425_p3 = pnand %p424_p2, %p418_p13 }
  0xed   : > { %v369_v6 = vpop.f32.mrb[0].mxu0 }
  0xee   : > { %v262_v7 = vadd.f32 %v369_v6, %v350_v5  ;;  %v256_v8 = vpop.f32.mrb[1].mxu0 }
  0xef   : > { %v257_v9 = vadd.f32 %v350_v5, %v256_v8 }
  0xf0   : > { %266 = vst [vmem:[%s164_s10 + $0x8] sm:$0xff] %v262_v7 }
  0xf1   : > { %265 = vst [vmem:[%s164_s10] sm:$0xff] %v257_v9 }
  0xf2   : > { %428 = shalt.err (!%p425_p3)
}
  0xf3   : > { %s429_s29 = scalar_lea.hbm %s570_s24, 256  ;;  %s433_s5 = scalar_lea.hbm %s616_s3, 512 }
  0xf4   : > { %p430_p4 = scmp.ne.s32.totalorder %s570_s24, %s429_s29  ;;  %p434_p9 = scmp.lt.u32.totalorder %s570_s24, %s616_s3 }
  0xf5   : > { %p435_p10 = scmp.lt.u32.totalorder %s433_s5, %s429_s29  ;;  %p437_p12 = scmp.lt.u32.totalorder %s429_s29, %s570_s24 }
  0xf6   : > { %p431_p7 = pnand %p430_p4, %p540_p5 }
  0xf7   : > { %p436_p11 = por %p435_p10, %p434_p9 }
  0xf8   : > { %p432_p8 = pneg %p431_p7 }
  0xf9   : > { %p438_p13 = por %p437_p12, %p436_p11 }
  0xfb   : > { %p439_p0 = pnand %p438_p13, %p432_p8 }
  0xfd   : > { %442 = shalt.err (!%p439_p0)
}
  0xfe   : > { %s480_s8 = smov 128   ;;  %s481_s9 = smov 8  }
  0xff   : > { %374 = dma.vmem_to_hbm [thread:$0]  (%p540_p5), %s565_s11, 256, %s570_s24, %s572_s25, %s480_s8, %s480_s8, %s481_s9  }
 0x100 PF: > { %p380_p1 = scmp.ge.s32.totalorder %s477_s15, 2  ;;  %s296_s10 = sand.u32 1, %s465_s12  }
 0x101   : > { %s297_s17 = scalar_lea.sflag [#allocation3], %s296_s10 }
 0x102   : > { %p377_p2 = pnand %p380_p1, %p544_p6 }
 0x104   : > { %460 = dma.done.wait (!%p377_p2), %s297_s17, 256  }
 0x105   : > { %462 = vsyncadd (!%p377_p2), %s297_s17, 4294967040  ;;  %p13_p3 = scmp.ge.s32.totalorder %s527_s18, 4   ;;  %s619_s12 = smov %s469_s13 }
 0x106   : > { %s620_s13 = smov %s473_s14  ;;  %s621_s14 = smov %s538_s21 }
 0x107   : > { %s622_s15 = smov %s527_s18  ;;  %15 = sbr.rel (!%p13_p3) target bundleno = 3 (0x3), region = 67 }
 0x10e   :  { %302 = vsyncpa [#allocation3], 1 }
 0x10f   :  { %304 = vsyncpa [#allocation3 + $0x1], 1 }

</bundles_post_ra>
